<compile_context>
chip_gen: v5e
topology: v5e:2x2
jax: 0.10.0
libtpu: 0.0.40
codegen_flags: <defaults>
</compile_context>

<pallas_src>
import functools

import jax
import jax.numpy as jnp
from jax.experimental import pallas as pl
from jax.experimental.pallas import tpu as pltpu


def _dist_linear_kernel(x_ref, v_ref, g_ref, o_ref, col_scale_ref):
    """Computes one (tm, tn) output tile: raw NT matmul + post-matmul scaling."""
    i = pl.program_id(1)  # batch-tile index (inner, "arbitrary")

    # Hoisted per-class scale g / ||v||: computed once per weight tile and
    # reused from VMEM scratch for every batch tile in this class tile.
    @pl.when(i == 0)
    def _():
        v32 = v_ref[...].astype(jnp.float32)                      # (tn, K)
        # Lane-dense squared row norms via a tiny NT matmul with a ones block
        # (rows of the (8, tn) result are identical); avoids any sublane->lane
        # relayout of a (tn, 1) reduction.
        ones8 = jnp.ones((8, v32.shape[1]), jnp.float32)
        v_sq = jax.lax.dot_general(
            ones8, v32 * v32,
            dimension_numbers=(((1,), (1,)), ((), ())),
            preferred_element_type=jnp.float32)                   # (8, tn)
        # WeightNorm(dim=0) has no epsilon; rsqrt issues on the EUP.
        col_scale_ref[...] = (g_ref[...].astype(jnp.float32)
                              * jax.lax.rsqrt(v_sq))              # (8, tn)

    # Per-batch-row scale 1 / (||x|| + 1e-5).  Operand is only (tm, 1), so the
    # exact sqrt+divide is negligible and keeps f32 tolerance tight.
    x = x_ref[...]                                                # (tm, K)
    x32 = x.astype(jnp.float32)
    x_sq = jnp.sum(x32 * x32, axis=1, keepdims=True)              # (tm, 1)
    row_scale = 1.0 / (jnp.sqrt(x_sq) + 1e-5)

    # Raw NT matmul on the un-normalized tiles (no .T, no normalized copies);
    # MXU accumulates in f32. Runs in the input dtype (bf16-capable).
    raw = jax.lax.dot_general(
        x, v_ref[...],
        dimension_numbers=(((1,), (1,)), ((), ())),
        preferred_element_type=jnp.float32)                       # (tm, tn)

    o_ref[...] = (raw * row_scale * col_scale_ref[0:1, :]).astype(o_ref.dtype)


def _round_up(a: int, m: int) -> int:
    return (a + m - 1) // m * m


@functools.partial(jax.jit, static_argnames=("tm", "tn"))
def dist_linear(x, v, g, *, tm=256, tn=256):
    """distLinear forward.

    x: (B, indim); v: (outdim, indim) WeightNorm 'weight_v'; g: (outdim, 1)
    WeightNorm 'weight_g'.  Returns (B, outdim) cosine-similarity logits.

    Default tiles (256, 256) are MXU-aligned on v6e/v7x and 128-aligned on
    v5e, and fit the scoped-VMEM default on every generation with indim up to
    a few thousand.  On v6e (128 MiB VMEM) tn can be raised to 512-1024.
    """
    B, K = x.shape
    N, K2 = v.shape
    assert K == K2 and g.shape == (N, 1)

    # Clamp tiles to the (padded) problem and pad: batch to a sublane multiple
    # of 8, outdim to a lane multiple of 128 (lane-dense unmasked stores).
    tm = min(tm, _round_up(B, 8))
    tn = min(tn, _round_up(N, 128))
    b_pad = _round_up(B, tm)
    n_pad = _round_up(N, tn)

    x_p = x if b_pad == B else jnp.pad(x, ((0, b_pad - B), (0, 0)))
    if n_pad == N:
        v_p, g_p = v, g
    else:
        # Padded classes get a unit weight row (finite norm) and g = 0, so the
        # (discarded) padded output columns are exactly zero — no NaN/Inf.
        v_pad = jnp.zeros((n_pad - N, K), v.dtype).at[:, 0].set(1)
        v_p = jnp.concatenate([v, v_pad], axis=0)
        g_p = jnp.concatenate([g, jnp.zeros((n_pad - N, 1), g.dtype)], axis=0)
    g_row = g_p.reshape(1, n_pad)  # lane-dense per-class gains

    grid = (n_pad // tn, b_pad // tm)  # (class tiles, batch tiles): v-major

    itemsize = jnp.dtype(x.dtype).itemsize
    # Double-buffered tiles + col_scale scratch, with generous headroom.
    vmem_needed = 2 * (tm * K + tn * K + tn + tm * tn) * itemsize + 8 * tn * 4
    vmem_limit = int(max(32 * 1024 * 1024, min(vmem_needed * 3, 64 * 1024 * 1024)))

    cost = pl.CostEstimate(
        flops=2 * b_pad * n_pad * K + 2 * b_pad * K + 2 * n_pad * K,
        transcendentals=b_pad + n_pad,
        bytes_accessed=(b_pad * K + n_pad * K + n_pad + b_pad * n_pad) * itemsize,
    )

    out = pl.pallas_call(
        _dist_linear_kernel,
        out_shape=jax.ShapeDtypeStruct((b_pad, n_pad), x.dtype),
        grid_spec=pltpu.PrefetchScalarGridSpec(
            num_scalar_prefetch=0,
            grid=grid,
            in_specs=[
                pl.BlockSpec((tm, K), lambda j, i: (i, 0)),   # x: batch tile
                pl.BlockSpec((tn, K), lambda j, i: (j, 0)),   # v: class tile (VMEM-resident over i)
                pl.BlockSpec((1, tn), lambda j, i: (0, j)),   # g: lane-dense gains
            ],
            out_specs=pl.BlockSpec((tm, tn), lambda j, i: (i, j)),
            scratch_shapes=[pltpu.VMEM((8, tn), jnp.float32)],  # hoisted g/||v||
        ),
        compiler_params=pltpu.CompilerParams(
            dimension_semantics=("parallel", "arbitrary"),
            vmem_limit_bytes=vmem_limit,
        ),
        cost_estimate=cost,
    )(x_p, v_p, g_row)

    return out[:B, :N]


if __name__ == "__main__":
    # Small shapes consistent with nn.Linear(indim, outdim, bias=False).
    B, indim, outdim = 8, 32, 16

    key = jax.random.PRNGKey(0)
    kx, kv, kg = jax.random.split(key, 3)
    x = jax.random.normal(kx, (B, indim), dtype=jnp.float32)
    # Deterministic "parameters" (v = weight_v, g = weight_g of WeightNorm).
    v = jax.random.normal(kv, (outdim, indim), dtype=jnp.float32) * 0.1
    g = jax.random.uniform(kg, (outdim, 1), dtype=jnp.float32) + 0.5

    out = dist_linear(x, v, g)
    jax.block_until_ready(out)

    # Pure-JAX reference of the same math.
    x_n = x / (jnp.linalg.norm(x, axis=1, keepdims=True) + 1e-5)
    w_eff = g * v / jnp.linalg.norm(v, axis=1, keepdims=True)
    ref = x_n @ w_eff.T
    assert out.shape == ref.shape
    assert jnp.allclose(out, ref, atol=1e-4, rtol=1e-4), (
        "mismatch vs reference: max abs err = "
        f"{float(jnp.max(jnp.abs(out - ref))):.3e}")

    print("KERNEL_OK")
</pallas_src>

<mosaic_0001>
module attributes {stable_mosaic.version = 11 : i64} {
  func.func @_dist_linear_kernel(%arg0: i32, %arg1: i32, %arg2: memref<8x32xf32, #tpu.memory_space<vmem>>, %arg3: memref<128x32xf32, #tpu.memory_space<vmem>>, %arg4: memref<1x128xf32, #tpu.memory_space<vmem>>, %arg5: memref<8x128xf32, #tpu.memory_space<vmem>>, %arg6: memref<8x128xf32, #tpu.memory_space<vmem>>) attributes {dimension_semantics = [#tpu.dimension_semantics<parallel>, #tpu.dimension_semantics<arbitrary>], iteration_bounds = array<i64: 1, 1>, scalar_prefetch = 0 : i64, scratch_operands = 1 : i64, tpu.core_type = #tpu.core_type<tc>, window_params = [{transform_indices = @transform_0, window_bounds = array<i64: 8, 32>}, {transform_indices = @transform_1, window_bounds = array<i64: 128, 32>}, {transform_indices = @transform_2, window_bounds = array<i64: 1, 128>}, {transform_indices = @transform_3, window_bounds = array<i64: 8, 128>}]} {
    %c0_i32 = arith.constant 0 : i32
    %0 = arith.cmpi eq, %arg1, %c0_i32 : i32
    %1 = arith.extui %0 : i1 to i32
    %c0_i32_0 = arith.constant 0 : i32
    %2 = arith.cmpi ne, %1, %c0_i32_0 : i32
    scf.if %2 {
      %c0_11 = arith.constant 0 : index
      %c0_12 = arith.constant 0 : index
      %20 = vector.load %arg3[%c0_11, %c0_12] : memref<128x32xf32, #tpu.memory_space<vmem>>, vector<128x32xf32>
      %cst_13 = arith.constant 1.000000e+00 : f32
      %21 = vector.broadcast %cst_13 : f32 to vector<8x32xf32>
      %22 = arith.mulf %20, %20 : vector<128x32xf32>
      %cst_14 = arith.constant dense<0.000000e+00> : vector<8x128xf32>
      %23 = tpu.matmul %21, %22, %cst_14 {dimension_numbers = #tpu.dot_dimension_numbers<[1], [1], [0], [0], [0, 0, 1, 0], [], []>} : vector<8x32xf32>, vector<128x32xf32>, vector<8x128xf32> -> vector<8x128xf32>
      %c0_15 = arith.constant 0 : index
      %c0_16 = arith.constant 0 : index
      %24 = vector.load %arg4[%c0_15, %c0_16] : memref<1x128xf32, #tpu.memory_space<vmem>>, vector<1x128xf32>
      %25 = math.rsqrt %23 : vector<8x128xf32>
      %26 = vector.broadcast %24 : vector<1x128xf32> to vector<8x128xf32>
      %27 = arith.mulf %26, %25 : vector<8x128xf32>
      %c0_17 = arith.constant 0 : index
      %c0_18 = arith.constant 0 : index
      %28 = vector.load %arg6[%c0_17, %c0_18] : memref<8x128xf32, #tpu.memory_space<vmem>>, vector<8x128xf32>
      tpu.vector_store %arg6[%c0_17, %c0_18], %27 {strides = array<i32>} : memref<8x128xf32, #tpu.memory_space<vmem>>, vector<8x128xf32>,
    } else {
    }
    %c0 = arith.constant 0 : index
    %c0_1 = arith.constant 0 : index
    %3 = vector.load %arg2[%c0, %c0_1] : memref<8x32xf32, #tpu.memory_space<vmem>>, vector<8x32xf32>
    %4 = arith.mulf %3, %3 : vector<8x32xf32>
    %cst = arith.constant dense<0.000000e+00> : vector<8xf32>
    %5 = vector.multi_reduction <add>, %4, %cst [1] : vector<8x32xf32> to vector<8xf32>
    %6 = vector.shape_cast %5 : vector<8xf32> to vector<8x1xf32>
    %7 = math.sqrt %6 : vector<8x1xf32>
    %cst_2 = arith.constant 9.99999974E-6 : f32
    %8 = vector.broadcast %cst_2 : f32 to vector<8x1xf32>
    %9 = arith.addf %7, %8 : vector<8x1xf32>
    %cst_3 = arith.constant 1.000000e+00 : f32
    %10 = vector.broadcast %cst_3 : f32 to vector<8x1xf32>
    %11 = arith.divf %10, %9 : vector<8x1xf32>
    %c0_4 = arith.constant 0 : index
    %c0_5 = arith.constant 0 : index
    %12 = vector.load %arg3[%c0_4, %c0_5] : memref<128x32xf32, #tpu.memory_space<vmem>>, vector<128x32xf32>
    %cst_6 = arith.constant dense<0.000000e+00> : vector<8x128xf32>
    %13 = tpu.matmul %3, %12, %cst_6 {dimension_numbers = #tpu.dot_dimension_numbers<[1], [1], [0], [0], [0, 0, 1, 0], [], []>} : vector<8x32xf32>, vector<128x32xf32>, vector<8x128xf32> -> vector<8x128xf32>
    %14 = vector.broadcast %11 : vector<8x1xf32> to vector<8x128xf32>
    %15 = arith.mulf %13, %14 : vector<8x128xf32>
    %c0_7 = arith.constant 0 : index
    %c0_8 = arith.constant 0 : index
    %16 = vector.load %arg6[%c0_7, %c0_8] : memref<8x128xf32, #tpu.memory_space<vmem>>, vector<1x128xf32>
    %17 = vector.broadcast %16 : vector<1x128xf32> to vector<8x128xf32>
    %18 = arith.mulf %15, %17 : vector<8x128xf32>
    %c0_9 = arith.constant 0 : index
    %c0_10 = arith.constant 0 : index
    %19 = vector.load %arg5[%c0_9, %c0_10] : memref<8x128xf32, #tpu.memory_space<vmem>>, vector<8x128xf32>
    tpu.vector_store %arg5[%c0_9, %c0_10], %18 {strides = array<i32>} : memref<8x128xf32, #tpu.memory_space<vmem>>, vector<8x128xf32>,
    return
  }
  func.func @transform_0(%arg0: i32, %arg1: i32) -> (i32, i32) {
    %c0_i32 = arith.constant 0 : i32
    %c0_i32_0 = arith.constant 0 : i32
    return %arg1, %c0_i32 : i32, i32
  }
  func.func @transform_1(%arg0: i32, %arg1: i32) -> (i32, i32) {
    %c0_i32 = arith.constant 0 : i32
    %c0_i32_0 = arith.constant 0 : i32
    return %arg0, %c0_i32 : i32, i32
  }
  func.func @transform_2(%arg0: i32, %arg1: i32) -> (i32, i32) {
    %c0_i32 = arith.constant 0 : i32
    %c0_i32_0 = arith.constant 0 : i32
    return %c0_i32, %arg0 : i32, i32
  }
  func.func @transform_3(%arg0: i32, %arg1: i32) -> (i32, i32) {
    %c0_i32 = arith.constant 0 : i32
    return %arg1, %arg0 : i32, i32
  }
}

</mosaic_0001>

<bundles_post_ra>
// kernel: dist_linear.1
= control target key start
LH: loop header
LB: loop body
LE: loop exit
PB: predicated region body
PF: predicated region fallthrough
CT: control target
= control target key end

     0   :  { %vm51_vm0 = vcmask 261120   ;;  %s470_s0 = inlined_call_operand.vmem [shape: f32[8,32], index: 0, kind: input, shape index: {}]   ;;  %s471_s1 = inlined_call_operand.vmem [shape: f32[128,32], index: 1, kind: input, shape index: {}]   ;;  %s472_s2 = inlined_call_operand.vmem [shape: f32[1,128], index: 2, kind: input, shape index: {}]   ;;  %s473_s3 = inlined_call_operand.hbm [shape: f32[8,128], index: 3, kind: output, shape index: {}]  }
   0x1   :  { %v188_v0 = vld [vmem:[%s471_s1 + $0x78] sm:$0xff]  ;;  %v187_v1 = vld [vmem:[%s471_s1 + $0x70] sm:$0xff]  ;;  %v383_v3 = vld [vmem:[%s470_s0] sm:$0xff] }
   0x2   :  { %298 = vmatpush.xpose.msk.msra.mxu1 %vm51_vm0, %v188_v0  ;;  %v50_v2 = vmul.f32 %v188_v0, %v188_v0  ;;  %v49_v4 = vmul.f32 %v187_v1, %v187_v1  ;;  %v140_v5 = vmul.f32 %v383_v3, %v383_v3  ;;  %v186_v6 = vld [vmem:[%s471_s1 + $0x68] sm:$0xff] }
   0x4   :  { %281 = vmatpush.xpose.msk.msra.mxu0 %vm51_vm0, %v50_v2 }
   0x5   :  { %8 = vsyncpa [#allocation4], 0  ;;  %v142_v7 = vsel %vm51_vm0, %v140_v5, 0.0  ;;  %v48_v8 = vmul.f32 %v186_v6, %v186_v6  ;;  %v185_v9 = vld [vmem:[%s471_s1 + $0x60] sm:$0xff]  ;;  %v184_v11 = vld [vmem:[%s471_s1 + $0x58] sm:$0xff]  ;;  %v351_v35 = vmov 1.0  }
   0x6   :  { %299 = vmatpush.xpose.msk.msra.mxu1 %vm51_vm0, %v187_v1  ;;  %143 = vadd.xlane.f32.xlu0 %v142_v7  ;;  %v47_v10 = vmul.f32 %v185_v9, %v185_v9  ;;  %v46_v12 = vmul.f32 %v184_v11, %v184_v11  ;;  %v183_v13 = vld [vmem:[%s471_s1 + $0x50] sm:$0xff]  ;;  %v182_v15 = vld [vmem:[%s471_s1 + $0x48] sm:$0xff]  ;;  %v181_v17 = vld [vmem:[%s471_s1 + $0x40] sm:$0xff]  ;;  %s352_s19 = smov [#allocation3]   ;;  %s272_s21 = sshll.u32 %s473_s3, 4  ;;  %s273_s21 = int_to_ptr.hbm [resolvable:$true] %s272_s21 }
   0x7   :  { %v45_v14 = vmul.f32 %v183_v13, %v183_v13  ;;  %v44_v16 = vmul.f32 %v182_v15, %v182_v15  ;;  %v43_v18 = vmul.f32 %v181_v17, %v181_v17  ;;  %v180_v19 = vld [vmem:[%s471_s1 + $0x38] sm:$0xff]  ;;  %v179_v21 = vld [vmem:[%s471_s1 + $0x30] sm:$0xff]  ;;  %v178_v23 = vld [vmem:[%s471_s1 + $0x28] sm:$0xff] }
   0x8   :  { %282 = vmatpush.xpose.msk.msra.mxu0 %vm51_vm0, %v49_v4  ;;  %v42_v20 = vmul.f32 %v180_v19, %v180_v19  ;;  %v41_v22 = vmul.f32 %v179_v21, %v179_v21  ;;  %v40_v24 = vmul.f32 %v178_v23, %v178_v23  ;;  %v177_v25 = vld [vmem:[%s471_s1 + $0x20] sm:$0xff]  ;;  %v176_v27 = vld [vmem:[%s471_s1 + $0x18] sm:$0xff]  ;;  %v175_v29 = vld [vmem:[%s471_s1 + $0x10] sm:$0xff] }
   0x9   :  { %v39_v26 = vmul.f32 %v177_v25, %v177_v25  ;;  %v38_v28 = vmul.f32 %v176_v27, %v176_v27  ;;  %v37_v30 = vmul.f32 %v175_v29, %v175_v29  ;;  %v174_v31 = vld [vmem:[%s471_s1 + $0x8] sm:$0xff]  ;;  %v173_v33 = vld [vmem:[%s471_s1] sm:$0xff] }
   0xa   :  { %300 = vmatpush.xpose.msk.msra.mxu1 %vm51_vm0, %v186_v6  ;;  %v36_v32 = vmul.f32 %v174_v31, %v174_v31  ;;  %v35_v34 = vmul.f32 %v173_v33, %v173_v33  ;;  %v317_v57 = vld [vmem:[%s472_s2] ss:$0 sm:$0xff]  ;;  %s270_s2 = sshll.u32 %s352_s19, 4  ;;  %s271_s2 = int_to_ptr.vmem [resolvable:$true] %s270_s2 }
   0xc   :  { %283 = vmatpush.xpose.msk.msra.mxu0 %vm51_vm0, %v48_v8 }
   0xe   :  { %301 = vmatpush.xpose.msk.msra.mxu1 %vm51_vm0, %v185_v9 }
  0x10   :  { %284 = vmatpush.xpose.msk.msra.mxu0 %vm51_vm0, %v47_v10 }
  0x12   :  { %302 = vmatpush.xpose.msk.msra.mxu1 %vm51_vm0, %v184_v11 }
  0x14   :  { %285 = vmatpush.xpose.msk.msra.mxu0 %vm51_vm0, %v46_v12 }
  0x16   :  { %303 = vmatpush.xpose.msk.msra.mxu1 %vm51_vm0, %v183_v13 }
  0x18   :  { %286 = vmatpush.xpose.msk.msra.mxu0 %vm51_vm0, %v45_v14 }
  0x1a   :  { %304 = vmatpush.xpose.msk.msra.mxu1 %vm51_vm0, %v182_v15 }
  0x1c   :  { %287 = vmatpush.xpose.msk.msra.mxu0 %vm51_vm0, %v44_v16 }
  0x1e   :  { %305 = vmatpush.xpose.msk.msra.mxu1 %vm51_vm0, %v181_v17 }
  0x20   :  { %288 = vmatpush.xpose.msk.msra.mxu0 %vm51_vm0, %v43_v18 }
  0x22   :  { %306 = vmatpush.xpose.msk.msra.mxu1 %vm51_vm0, %v180_v19 }
  0x24   :  { %289 = vmatpush.xpose.msk.msra.mxu0 %vm51_vm0, %v42_v20 }
  0x26   :  { %307 = vmatpush.xpose.msk.msra.mxu1 %vm51_vm0, %v179_v21 }
  0x28   :  { %290 = vmatpush.xpose.msk.msra.mxu0 %vm51_vm0, %v41_v22 }
  0x2a   :  { %308 = vmatpush.xpose.msk.msra.mxu1 %vm51_vm0, %v178_v23 }
  0x2c   :  { %291 = vmatpush.xpose.msk.msra.mxu0 %vm51_vm0, %v40_v24 }
  0x2e   :  { %309 = vmatpush.xpose.msk.msra.mxu1 %vm51_vm0, %v177_v25 }
  0x30   :  { %292 = vmatpush.xpose.msk.msra.mxu0 %vm51_vm0, %v39_v26 }
  0x32   :  { %310 = vmatpush.xpose.msk.msra.mxu1 %vm51_vm0, %v176_v27 }
  0x34   :  { %293 = vmatpush.xpose.msk.msra.mxu0 %vm51_vm0, %v38_v28 }
  0x36   :  { %311 = vmatpush.xpose.msk.msra.mxu1 %vm51_vm0, %v175_v29 }
  0x38   :  { %294 = vmatpush.xpose.msk.msra.mxu0 %vm51_vm0, %v37_v30 }
  0x3a   :  { %312 = vmatpush.xpose.msk.msra.mxu1 %vm51_vm0, %v174_v31 }
  0x3c   :  { %295 = vmatpush.xpose.msk.msra.mxu0 %vm51_vm0, %v36_v32 }
  0x3e   :  { %313 = vmatpush.xpose.msk.msra.mxu1 %vm51_vm0, %v173_v33 }
  0x40   :  { %296 = vmatpush.xpose.msk.msra.mxu0 %vm51_vm0, %v35_v34 }
  0x41   :  { %314 = vmatmul.msk.f32.vlgmr.msra.gmra.mxu1 %vm51_vm0, %v383_v3 }
  0x43   :  { %297 = vmatmul.msk.f32.vlgmr.msra.gmra.mxu0 %vm51_vm0, %v351_v35 }
  0x79   :  { %v144_v36 = vpop.xlane.xlu0 %143 }
  0x7a   :  { %319 = vrsqrt.f32 %v144_v36  ;;  %vm152_vm1 = vcmp.eq.f32.partialorder %v144_v36, inf  ;;  %v155_v44 = vand.u32 2147483648, %v144_v36  ;;  %vm154_vm2 = vcmp.eq.f32.partialorder %v144_v36, 0.0 }
  0x80   :  { %v320_v37 = vpop.eup %319 }
  0x81   :  { %v146_v38 = vmul.f32 %v320_v37, %v144_v36 }
  0x83   :  { %v147_v39 = vmul.f32 %v320_v37, %v146_v38 }
  0x85   :  { %v148_v40 = vmul.f32 0.5, %v147_v39 }
  0x87   :  { %v149_v41 = vsub.f32 1.5, %v148_v40 }
  0x89   :  { %v150_v42 = vmul.f32 %v320_v37, %v149_v41 }
  0x8b   :  { %v151_v43 = vmul.f32 %v150_v42, %v144_v36 }
  0x8d   :  { %v153_v45 = vsel %vm152_vm1, %v144_v36, %v151_v43 }
  0x8e   :  { %v156_v46 = vsel %vm154_vm2, %v155_v44, %v153_v45 }
  0x8f   :  { %v157_v47 = vadd.f32 1e-05, %v156_v46 }
  0x91   :  { %321 = vrcp.f32 %v157_v47  ;;  %vm163_vm6 = vweird.f32 %v157_v47  ;;  %v169_v61 = vand.u32 2147483648, %v157_v47  ;;  %v167_v0 = vand.u32 2147483647, %v157_v47 }
  0x93   :  { %v170_v1 = vor.u32 1.1754944e-38, %v169_v61  ;;  %vm168_vm9 = vcmp.eq.f32.partialorder %v167_v0, 8.507059e+37 }
  0x97   :  { %v322_v49 = vpop.eup %321 }
  0x98   :  { %v159_v51 = vmul.f32 %v322_v49, %v157_v47  ;;  %vm164_vm7 = vweird.f32 %v322_v49 }
  0x99   :  { %vm165_vm8 = vmor %vm163_vm6, %vm164_vm7 }
  0x9a   :  { %v160_v54 = vsub.f32 1.0, %v159_v51 }
  0x9c   :  { %v161_v58 = vmul.f32 %v322_v49, %v160_v54 }
  0x9e   :  { %v162_v63 = vadd.f32 %v322_v49, %v161_v58 }
  0xa0   :  { %v166_v2 = vsel %vm165_vm8, %v322_v49, %v162_v63 }
  0xa1   :  { %v171_v4 = vsel %vm168_vm9, %v170_v1, %v166_v2 }
  0xbe   :  { %v257_v3 = vpop.f32.mrf.mxu1 }
  0xbf   :  { %v260_v5 = vmul.f32 %v257_v3, %v171_v4 }
  0xc0   :  { %v120_v48 = vpop.f32.mrf.mxu0 }
  0xc1   :  { %323 = vrsqrt.f32 %v120_v48  ;;  %vm130_vm4 = vweird.f32 %v120_v48 }
  0xc7   :  { %v324_v50 = vpop.eup %323 }
  0xc8   :  { %v125_v52 = vmul.f32 %v324_v50, %v120_v48  ;;  %vm131_vm3 = vweird.f32 %v324_v50 }
  0xc9   :  { %vm132_vm5 = vmor %vm130_vm4, %vm131_vm3 }
  0xca   :  { %v126_v53 = vmul.f32 %v324_v50, %v125_v52 }
  0xcc   :  { %v127_v55 = vmul.f32 0.5, %v126_v53 }
  0xce   :  { %v128_v56 = vsub.f32 1.5, %v127_v55 }
  0xd0   :  { %v129_v59 = vmul.f32 %v324_v50, %v128_v56 }
  0xd2   :  { %v133_v60 = vsel %vm132_vm5, %v324_v50, %v129_v59 }
  0xd3   :  { %v137_v62 = vmul.f32 %v317_v57, %v133_v60 }
  0xd5   :  { %138 = vst [vmem:[#allocation2] sm:$0xff] %v137_v62 }
  0xdc   :  { %v318_v6 = vld [vmem:[#allocation2] ss:$0 sm:$0xff] }
  0xdd   :  { %v263_v7 = vmul.f32 %v318_v6, %v260_v5 }
  0xdf   :  { %264 = vst [vmem:[#allocation3] sm:$0xff] %v263_v7 }
  0xe0   :  { %275 = dma.vmem_to_hbm [thread:$0]  %s271_s2, 128, %s273_s21, [#allocation4]  }
  0xe1   :  { %349 = dma.done.wait [#allocation4], 128  }
  0xe2   :  { %350 = vsyncadd [#allocation4], 4294967168 }
  0xe3   :  { %280 = vsyncpa [#allocation4], 1 }

</bundles_post_ra>
